<compile_context>
chip_gen: v7x
topology: tpu7x:2x2x1
jax: 0.10.0
libtpu: 0.0.40
codegen_flags: <defaults>
</compile_context>

<pallas_src>
import functools

import jax
import jax.numpy as jnp
from jax.experimental import pallas as pl
from jax.experimental.pallas import tpu as pltpu


def _round_up(x, m):
    return -(-x // m) * m


_BB_MAX = 128     # decoder states per grid step (generation-tunable, see header)
_SEQ_CHUNK = 8    # encoder rows per inner step (bounds the live tanh tile)


# ----------------------------------------------------------------------------
# Kernel factory: one batch-block of decoder states per grid step
# ----------------------------------------------------------------------------
def _make_kernel(seq_len, seq_pad, chunk):
    n_chunks = seq_pad // chunk

    def kernel(dec_ref, enc_ref, encproj_ref, wattn_ref, arow_ref,
               we1_ref, wd1_ref, we2_ref, wd2_ref, bh_ref,
               enc_out_ref, dec_out_ref, eng_ref):
        dec = dec_ref[...]                                   # (BB, Dpad)
        ba = arow_ref[0:1, :]                                # (1, Epad) attn.attn bias
        ws = arow_ref[1:2, :]                                # (1, Epad) attn.score weight
        ws3 = ws[:, None, :]                                 # (1, 1, Epad)

        # decoder half of the attention projection (encoder half is hoisted
        # out of the kernel and arrives pre-computed as encproj_ref)
        dec_proj = jnp.dot(dec, wattn_ref[...],
                           preferred_element_type=jnp.float32) + ba    # (BB, Epad)

        # ---- attention energies, streamed over the sequence axis -----------
        # live tile per step: (chunk, BB, Epad); energies stored transposed as
        # (Sp, BB) so every chunk write is a sublane-aligned row store.
        def energies_for_chunk(start):
            ep = encproj_ref[pl.ds(start, chunk), :]                    # (chunk, Epad)
            t = jnp.tanh(ep[:, None, :] + dec_proj[None, :, :])         # (chunk, BB, Epad)
            eng_ref[pl.ds(start, chunk), :] = jnp.sum(t * ws3, axis=-1)  # (chunk, BB)

        if n_chunks <= 16:
            for c in range(n_chunks):              # short sequences: fully unrolled
                energies_for_chunk(c * chunk)
        else:
            @pl.loop(0, n_chunks)                  # long sequences: bounded-VMEM loop
            def _(c):
                energies_for_chunk(pl.multiple_of(c * chunk, chunk))

        # ---- softmax over the true sequence positions ------------------------
        eng = eng_ref[...]                                              # (Sp, BB)
        if seq_pad != seq_len:
            row = jax.lax.broadcasted_iota(jnp.int32, eng.shape, 0)
            eng = jnp.where(row < seq_len, eng, -1e30)
        m = jnp.max(eng, axis=0, keepdims=True)                         # (1, BB)
        p = jnp.exp(eng - m)                                            # (Sp, BB)
        denom = jnp.sum(p, axis=0, keepdims=True)                       # (1, BB)
        inv = pl.reciprocal(denom, approx=True)                         # EUP slot
        inv = inv * (2.0 - denom * inv)                                 # Newton -> f32
        w = p * inv                                                     # (Sp, BB)

        # ---- weighted context + the two projection heads ---------------------
        align = jax.lax.dot_general(                                    # (BB, Epad)
            w, enc_ref[...],
            dimension_numbers=(((0,), (0,)), ((), ())),
            preferred_element_type=jnp.float32)

        be1 = bh_ref[0:1, :]
        bd1 = bh_ref[1:2, :]
        be2 = bh_ref[2:3, :]
        bd2 = bh_ref[3:4, :]
        e1 = jnp.tanh(jnp.dot(align, we1_ref[...],
                              preferred_element_type=jnp.float32) + be1)
        enc_out_ref[...] = jnp.dot(e1, we2_ref[...],
                                   preferred_element_type=jnp.float32) + be2
        d1 = jnp.tanh(jnp.dot(dec, wd1_ref[...],
                              preferred_element_type=jnp.float32) + bd1)
        dec_out_ref[...] = jnp.dot(d1, wd2_ref[...],
                                   preferred_element_type=jnp.float32) + bd2

    return kernel


# ----------------------------------------------------------------------------
# One-time parameter preparation (hoisted out of the per-call path)
# ----------------------------------------------------------------------------
def prepare_params(params):
    """Pack / pad the PyTorch-convention parameters into lane-dense slabs.

    Run once; reuse the result for every forward call.
    Returns (slabs_dict, dims_dict).
    """
    f32 = jnp.float32
    w_attn = jnp.asarray(params["attn.attn.weight"], f32)     # (E, D+E)
    we1 = jnp.asarray(params["encoder_linear1.weight"], f32)  # (H, E)
    wd1 = jnp.asarray(params["decoder_linear1.weight"], f32)  # (H, D)
    we2 = jnp.asarray(params["encoder_linear2.weight"], f32)  # (H, H)
    wd2 = jnp.asarray(params["decoder_linear2.weight"], f32)  # (H, H)
    E, D, H = we1.shape[1], wd1.shape[1], we1.shape[0]
    Epad, Dpad, Hpad = _round_up(E, 128), _round_up(D, 128), _round_up(H, 128)

    def pad2(x, r, c):
        return jnp.pad(x, ((0, r - x.shape[0]), (0, c - x.shape[1])))

    def pack_rows(vecs, n_rows, n_cols):
        m = jnp.stack([jnp.pad(jnp.asarray(v, f32), (0, n_cols - v.shape[0]))
                       for v in vecs], axis=0)
        return jnp.pad(m, ((0, n_rows - m.shape[0]), (0, 0)))

    slabs = {
        # attn.attn.weight split into decoder / encoder halves (transposed).
        # The encoder half is only used for the hoisted enc_proj matmul.
        "w_attn_dec": pad2(w_attn[:, :D].T, Dpad, Epad),       # (Dpad, Epad)
        "w_attn_enc": pad2(w_attn[:, D:].T, Epad, Epad),       # (Epad, Epad)
        # row 0: attn.attn.bias, row 1: attn.score.weight (rest zero)
        "attn_rows": pack_rows(
            [params["attn.attn.bias"],
             jnp.asarray(params["attn.score.weight"], f32)[0]], 8, Epad),
        "we1": pad2(we1.T, Epad, Hpad),                        # (Epad, Hpad)
        "wd1": pad2(wd1.T, Dpad, Hpad),                        # (Dpad, Hpad)
        "we2": pad2(we2.T, Hpad, Hpad),                        # (Hpad, Hpad)
        "wd2": pad2(wd2.T, Hpad, Hpad),                        # (Hpad, Hpad)
        # rows: enc1 bias, dec1 bias, enc2 bias, dec2 bias (rest zero)
        "b_heads": pack_rows(
            [params["encoder_linear1.bias"], params["decoder_linear1.bias"],
             params["encoder_linear2.bias"], params["decoder_linear2.bias"]],
            8, Hpad),
    }
    dims = {"encoder_size": E, "decoder_size": D, "hidden_size": H}
    return slabs, dims


# ----------------------------------------------------------------------------
# Host wrapper (jitted: padding, hoisted enc_proj matmul, pallas_call, slicing)
# ----------------------------------------------------------------------------
@functools.partial(jax.jit, static_argnames=("hidden_size",))
def _forward(decoder_hidden, encoder_outputs, slabs, *, hidden_size):
    B, D = decoder_hidden.shape
    S, E = encoder_outputs.shape
    Dpad, Epad = slabs["w_attn_dec"].shape
    Hpad = slabs["we1"].shape[1]
    Sp = _round_up(S, _SEQ_CHUNK)

    # batch-block sizing: one block for typical decode (B=1); multiple blocks
    # (grid steps, "parallel") only when B is large.
    Bp8 = _round_up(B, 8)
    if Bp8 <= _BB_MAX:
        BB, Bp = Bp8, Bp8
    else:
        BB = _BB_MAX
        Bp = _round_up(B, BB)

    dec = jnp.pad(decoder_hidden.astype(jnp.float32),
                  ((0, Bp - B), (0, Dpad - D)))                         # (Bp, Dpad)
    enc = jnp.pad(encoder_outputs.astype(jnp.float32),
                  ((0, Sp - S), (0, Epad - E)))                         # (Sp, Epad)
    # grid-invariant encoder half of the attention projection, hoisted out of
    # the kernel (computed once per call, not once per grid step).
    enc_proj = jnp.dot(enc, slabs["w_attn_enc"],
                       preferred_element_type=jnp.float32)              # (Sp, Epad)

    kernel = _make_kernel(S, Sp, _SEQ_CHUNK)

    # advisory cost estimate so XLA can overlap the call with surrounding ops
    flops = (2 * Bp * (Dpad * Epad + Sp * Epad + Epad * Hpad + Dpad * Hpad
                       + 2 * Hpad * Hpad) + 3 * Bp * Sp * Epad)
    transcendentals = Bp * Sp * Epad + 2 * Bp * Hpad + Bp * Sp
    bytes_accessed = 4 * (Bp * Dpad + 2 * Sp * Epad + Dpad * Epad + 8 * Epad
                          + Epad * Hpad + Dpad * Hpad + 2 * Hpad * Hpad
                          + 8 * Hpad + 2 * Bp * Hpad)

    # explicit scoped-VMEM budget (v5e default is only 16 MiB); capped below
    # v7x's 64 MiB physical VMEM.
    resident = 4 * (2 * Sp * Epad + Dpad * Epad + 8 * Epad + Epad * Hpad
                    + Dpad * Hpad + 2 * Hpad * Hpad + 8 * Hpad)
    per_block = 4 * (BB * Dpad + 2 * BB * Hpad)
    working = 4 * (3 * BB * Epad + 2 * _SEQ_CHUNK * BB * Epad + 3 * Sp * BB
                   + 2 * BB * Hpad)
    vmem_limit = int(min(max(2 * (resident + per_block) + working + (8 << 20),
                             16 << 20), 48 << 20))

    enc_out, dec_out = pl.pallas_call(
        kernel,
        out_shape=(jax.ShapeDtypeStruct((Bp, Hpad), jnp.float32),
                   jax.ShapeDtypeStruct((Bp, Hpad), jnp.float32)),
        grid=(Bp // BB,),
        in_specs=[
            pl.BlockSpec((BB, Dpad), lambda i: (i, 0)),      # decoder states (blocked)
            pl.BlockSpec((Sp, Epad), lambda i: (0, 0)),      # encoder outputs
            pl.BlockSpec((Sp, Epad), lambda i: (0, 0)),      # hoisted enc_proj
            pl.BlockSpec((Dpad, Epad), lambda i: (0, 0)),    # attn weight (decoder half)
            pl.BlockSpec((8, Epad), lambda i: (0, 0)),       # attn bias + score rows
            pl.BlockSpec((Epad, Hpad), lambda i: (0, 0)),    # encoder_linear1.weight.T
            pl.BlockSpec((Dpad, Hpad), lambda i: (0, 0)),    # decoder_linear1.weight.T
            pl.BlockSpec((Hpad, Hpad), lambda i: (0, 0)),    # encoder_linear2.weight.T
            pl.BlockSpec((Hpad, Hpad), lambda i: (0, 0)),    # decoder_linear2.weight.T
            pl.BlockSpec((8, Hpad), lambda i: (0, 0)),       # head biases
        ],
        out_specs=[
            pl.BlockSpec((BB, Hpad), lambda i: (i, 0)),      # encoder head (lane dense)
            pl.BlockSpec((BB, Hpad), lambda i: (i, 0)),      # decoder head (lane dense)
        ],
        scratch_shapes=[pltpu.VMEM((Sp, BB), jnp.float32)],  # attention energies
        compiler_params=pltpu.CompilerParams(
            dimension_semantics=("parallel",),
            vmem_limit_bytes=vmem_limit),
        cost_estimate=pl.CostEstimate(flops=flops,
                                      transcendentals=transcendentals,
                                      bytes_accessed=bytes_accessed),
    )(dec, enc, enc_proj, slabs["w_attn_dec"], slabs["attn_rows"],
      slabs["we1"], slabs["wd1"], slabs["we2"], slabs["wd2"], slabs["b_heads"])

    H = hidden_size
    return enc_out[:B, :H], dec_out[:B, :H]


def seq2tree_semantic_alignment(decoder_hidden, encoder_outputs, prepared):
    """decoder_hidden: (B, D); encoder_outputs: (S, E); prepared = prepare_params(...).

    Returns (encoder_linear2, decoder_linear2), each (B, H).  B = 1 reproduces
    the PyTorch module exactly (whose outputs are these values shaped (1,1,H)).
    """
    slabs, dims = prepared
    return _forward(decoder_hidden, encoder_outputs, slabs,
                    hidden_size=dims["hidden_size"])


# ----------------------------------------------------------------------------
# Pure-JAX reference (mirrors the PyTorch forward) for correctness checks
# ----------------------------------------------------------------------------
def _reference(decoder_hidden, encoder_outputs, params):
    S = encoder_outputs.shape[0]
    hid = jnp.broadcast_to(decoder_hidden, (S, decoder_hidden.shape[1]))
    energy_in = jnp.concatenate([hid, encoder_outputs], axis=1)
    attn_h = jnp.tanh(energy_in @ params["attn.attn.weight"].T + params["attn.attn.bias"])
    energies = (attn_h @ params["attn.score.weight"].T)[:, 0]             # (S,)
    w = jax.nn.softmax(energies)
    align = (w[:, None] * encoder_outputs).sum(axis=0, keepdims=True)     # (1, E)
    enc1 = jnp.tanh(align @ params["encoder_linear1.weight"].T + params["encoder_linear1.bias"])
    enc2 = enc1 @ params["encoder_linear2.weight"].T + params["encoder_linear2.bias"]
    dec1 = jnp.tanh(decoder_hidden @ params["decoder_linear1.weight"].T + params["decoder_linear1.bias"])
    dec2 = dec1 @ params["decoder_linear2.weight"].T + params["decoder_linear2.bias"]
    return enc2.reshape(1, 1, -1), dec2.reshape(1, 1, -1)


def _reference_batched(decoder_hidden, encoder_outputs, params):
    def one(dh):
        e2, d2 = _reference(dh[None, :], encoder_outputs, params)
        return e2[0, 0], d2[0, 0]
    return jax.vmap(one)(decoder_hidden)


# ----------------------------------------------------------------------------
# Deterministic parameter construction (shapes follow the module's __init__)
# ----------------------------------------------------------------------------
def make_params(key, encoder_hidden_size, decoder_hidden_size, hidden_size):
    E, D, H = encoder_hidden_size, decoder_hidden_size, hidden_size
    ks = jax.random.split(key, 9)
    n = lambda k, shape: (0.1 * jax.random.normal(k, shape)).astype(jnp.float32)
    return {
        # Attn(encoder_hidden_size, bidirectional_encoder=True)
        "attn.attn.weight": n(ks[0], (E, 2 * E)),
        "attn.attn.bias":   n(ks[1], (E,)),
        "attn.score.weight": n(ks[2], (1, E)),
        # projection heads
        "encoder_linear1.weight": n(ks[3], (H, E)),
        "encoder_linear1.bias":   n(ks[4], (H,)),
        "encoder_linear2.weight": n(ks[5], (H, H)),
        "encoder_linear2.bias":   jnp.zeros((H,), jnp.float32),
        "decoder_linear1.weight": n(ks[6], (H, D)),
        "decoder_linear1.bias":   n(ks[7], (H,)),
        "decoder_linear2.weight": n(ks[8], (H, H)),
        "decoder_linear2.bias":   jnp.zeros((H,), jnp.float32),
    }


if __name__ == "__main__":
    # The module's cat((hidden, encoder_outputs), 2).view(-1, 2*encoder_hidden_size)
    # requires the decoder feature dim == encoder feature dim in practice.
    S, E, D, H = 8, 32, 32, 32

    key = jax.random.PRNGKey(0)
    k_dec, k_enc, k_par, k_bat = jax.random.split(key, 4)
    decoder_hidden = jax.random.normal(k_dec, (1, D), dtype=jnp.float32)
    encoder_outputs = jax.random.normal(k_enc, (S, E), dtype=jnp.float32)
    params = make_params(k_par, E, D, H)

    # one-time packing / padding of parameters (hoisted out of the call path)
    prepared = prepare_params(params)
    jax.block_until_ready(prepared[0])

    # --- B = 1: exact module semantics --------------------------------------
    enc2, dec2 = seq2tree_semantic_alignment(decoder_hidden, encoder_outputs, prepared)
    jax.block_until_ready((enc2, dec2))
    ref_enc2, ref_dec2 = _reference(decoder_hidden, encoder_outputs, params)
    assert enc2.shape == (1, H) and dec2.shape == (1, H)
    assert jnp.allclose(enc2, ref_enc2.reshape(1, H), atol=1e-4, rtol=1e-4)
    assert jnp.allclose(dec2, ref_dec2.reshape(1, H), atol=1e-4, rtol=1e-4)

    # --- B = 8: batched decoder states (throughput path, same per-row math) --
    dec_batch = jax.random.normal(k_bat, (8, D), dtype=jnp.float32)
    enc2_b, dec2_b = seq2tree_semantic_alignment(dec_batch, encoder_outputs, prepared)
    jax.block_until_ready((enc2_b, dec2_b))
    ref_eb, ref_db = _reference_batched(dec_batch, encoder_outputs, params)
    assert enc2_b.shape == (8, H) and dec2_b.shape == (8, H)
    assert jnp.allclose(enc2_b, ref_eb, atol=1e-4, rtol=1e-4)
    assert jnp.allclose(dec2_b, ref_db, atol=1e-4, rtol=1e-4)

    print("KERNEL_OK")
</pallas_src>

<mosaic_0001>
module attributes {stable_mosaic.version = 11 : i64} {
  func.func @kernel(%arg0: i32, %arg1: memref<8x128xf32, #tpu.memory_space<vmem>>, %arg2: memref<8x128xf32, #tpu.memory_space<vmem>>, %arg3: memref<8x128xf32, #tpu.memory_space<vmem>>, %arg4: memref<128x128xf32, #tpu.memory_space<vmem>>, %arg5: memref<8x128xf32, #tpu.memory_space<vmem>>, %arg6: memref<128x128xf32, #tpu.memory_space<vmem>>, %arg7: memref<128x128xf32, #tpu.memory_space<vmem>>, %arg8: memref<128x128xf32, #tpu.memory_space<vmem>>, %arg9: memref<128x128xf32, #tpu.memory_space<vmem>>, %arg10: memref<8x128xf32, #tpu.memory_space<vmem>>, %arg11: memref<8x128xf32, #tpu.memory_space<vmem>>, %arg12: memref<8x128xf32, #tpu.memory_space<vmem>>, %arg13: memref<8x8xf32, #tpu.memory_space<vmem>>) attributes {dimension_semantics = [#tpu.dimension_semantics<parallel>], iteration_bounds = array<i64: 1>, scalar_prefetch = 0 : i64, scratch_operands = 1 : i64, tpu.core_type = #tpu.core_type<tc>, window_params = [{transform_indices = @transform_0, window_bounds = array<i64: 8, 128>}, {pipeline_mode = #tpu.pipeline_mode<synchronous>, transform_indices = @transform_1, window_bounds = array<i64: 8, 128>}, {pipeline_mode = #tpu.pipeline_mode<synchronous>, transform_indices = @transform_2, window_bounds = array<i64: 8, 128>}, {pipeline_mode = #tpu.pipeline_mode<synchronous>, transform_indices = @transform_3, window_bounds = array<i64: 128, 128>}, {pipeline_mode = #tpu.pipeline_mode<synchronous>, transform_indices = @transform_4, window_bounds = array<i64: 8, 128>}, {pipeline_mode = #tpu.pipeline_mode<synchronous>, transform_indices = @transform_5, window_bounds = array<i64: 128, 128>}, {pipeline_mode = #tpu.pipeline_mode<synchronous>, transform_indices = @transform_6, window_bounds = array<i64: 128, 128>}, {pipeline_mode = #tpu.pipeline_mode<synchronous>, transform_indices = @transform_7, window_bounds = array<i64: 128, 128>}, {pipeline_mode = #tpu.pipeline_mode<synchronous>, transform_indices = @transform_8, window_bounds = array<i64: 128, 128>}, {pipeline_mode = #tpu.pipeline_mode<synchronous>, transform_indices = @transform_9, window_bounds = array<i64: 8, 128>}, {transform_indices = @transform_10, window_bounds = array<i64: 8, 128>}, {transform_indices = @transform_11, window_bounds = array<i64: 8, 128>}]} {
    %c0 = arith.constant 0 : index
    %c0_0 = arith.constant 0 : index
    %0 = vector.load %arg1[%c0, %c0_0] : memref<8x128xf32, #tpu.memory_space<vmem>>, vector<8x128xf32>
    %c0_1 = arith.constant 0 : index
    %c0_2 = arith.constant 0 : index
    %1 = vector.load %arg5[%c0_1, %c0_2] : memref<8x128xf32, #tpu.memory_space<vmem>>, vector<1x128xf32>
    %c1 = arith.constant 1 : index
    %c0_3 = arith.constant 0 : index
    %2 = vector.load %arg5[%c1, %c0_3] : memref<8x128xf32, #tpu.memory_space<vmem>>, vector<1x128xf32>
    %3 = vector.shape_cast %2 : vector<1x128xf32> to vector<1x1x128xf32>
    %c0_4 = arith.constant 0 : index
    %c0_5 = arith.constant 0 : index
    %4 = vector.load %arg4[%c0_4, %c0_5] : memref<128x128xf32, #tpu.memory_space<vmem>>, vector<128x128xf32>
    %cst = arith.constant dense<0.000000e+00> : vector<8x128xf32>
    %5 = tpu.matmul %0, %4, %cst {dimension_numbers = #tpu.dot_dimension_numbers<[1], [0], [0], [1], [0, 0, 1, 1], [], []>} : vector<8x128xf32>, vector<128x128xf32>, vector<8x128xf32> -> vector<8x128xf32>
    %6 = vector.broadcast %1 : vector<1x128xf32> to vector<8x128xf32>
    %7 = arith.addf %5, %6 : vector<8x128xf32>
    %c0_6 = arith.constant 0 : index
    %c0_7 = arith.constant 0 : index
    %8 = vector.load %arg3[%c0_6, %c0_7] : memref<8x128xf32, #tpu.memory_space<vmem>>, vector<8x128xf32>
    %9 = vector.shape_cast %8 : vector<8x128xf32> to vector<8x1x128xf32>
    %10 = vector.shape_cast %7 : vector<8x128xf32> to vector<1x8x128xf32>
    %11 = vector.broadcast %9 : vector<8x1x128xf32> to vector<8x8x128xf32>
    %12 = vector.broadcast %10 : vector<1x8x128xf32> to vector<8x8x128xf32>
    %13 = arith.addf %11, %12 : vector<8x8x128xf32>
    %14 = math.tanh %13 : vector<8x8x128xf32>
    %15 = vector.broadcast %3 : vector<1x1x128xf32> to vector<8x8x128xf32>
    %16 = arith.mulf %14, %15 : vector<8x8x128xf32>
    %cst_8 = arith.constant dense<0.000000e+00> : vector<8x8xf32>
    %17 = vector.multi_reduction <add>, %16, %cst_8 [2] : vector<8x8x128xf32> to vector<8x8xf32>
    %c0_9 = arith.constant 0 : index
    %c0_10 = arith.constant 0 : index
    %18 = vector.load %arg13[%c0_9, %c0_10] : memref<8x8xf32, #tpu.memory_space<vmem>>, vector<8x8xf32>
    tpu.vector_store %arg13[%c0_9, %c0_10], %17 {strides = array<i32>} : memref<8x8xf32, #tpu.memory_space<vmem>>, vector<8x8xf32>,
    %c0_11 = arith.constant 0 : index
    %c0_12 = arith.constant 0 : index
    %19 = vector.load %arg13[%c0_11, %c0_12] : memref<8x8xf32, #tpu.memory_space<vmem>>, vector<8x8xf32>
    %cst_13 = arith.constant dense<0xFF800000> : vector<8xf32>
    %20 = vector.multi_reduction <maximumf>, %19, %cst_13 [0] : vector<8x8xf32> to vector<8xf32>
    %21 = vector.shape_cast %20 : vector<8xf32> to vector<1x8xf32>
    %22 = vector.broadcast %21 : vector<1x8xf32> to vector<8x8xf32>
    %23 = arith.subf %19, %22 : vector<8x8xf32>
    %24 = math.exp %23 : vector<8x8xf32>
    %cst_14 = arith.constant dense<0.000000e+00> : vector<8xf32>
    %25 = vector.multi_reduction <add>, %24, %cst_14 [0] : vector<8x8xf32> to vector<8xf32>
    %26 = vector.shape_cast %25 : vector<8xf32> to vector<1x8xf32>
    %27 = tpu.reciprocal %26 {approx = true} : vector<1x8xf32> -> vector<1x8xf32>
    %28 = arith.mulf %26, %27 : vector<1x8xf32>
    %cst_15 = arith.constant 2.000000e+00 : f32
    %29 = vector.broadcast %cst_15 : f32 to vector<1x8xf32>
    %30 = arith.subf %29, %28 : vector<1x8xf32>
    %31 = arith.mulf %27, %30 : vector<1x8xf32>
    %32 = vector.broadcast %31 : vector<1x8xf32> to vector<8x8xf32>
    %33 = arith.mulf %24, %32 : vector<8x8xf32>
    %c0_16 = arith.constant 0 : index
    %c0_17 = arith.constant 0 : index
    %34 = vector.load %arg2[%c0_16, %c0_17] : memref<8x128xf32, #tpu.memory_space<vmem>>, vector<8x128xf32>
    %cst_18 = arith.constant dense<0.000000e+00> : vector<8x128xf32>
    %35 = tpu.matmul %33, %34, %cst_18 {dimension_numbers = #tpu.dot_dimension_numbers<[0], [0], [1], [1], [0, 1, 1, 1], [], []>} : vector<8x8xf32>, vector<8x128xf32>, vector<8x128xf32> -> vector<8x128xf32>
    %c0_19 = arith.constant 0 : index
    %c0_20 = arith.constant 0 : index
    %36 = vector.load %arg10[%c0_19, %c0_20] : memref<8x128xf32, #tpu.memory_space<vmem>>, vector<1x128xf32>
    %c1_21 = arith.constant 1 : index
    %c0_22 = arith.constant 0 : index
    %37 = vector.load %arg10[%c1_21, %c0_22] : memref<8x128xf32, #tpu.memory_space<vmem>>, vector<1x128xf32>
    %c2 = arith.constant 2 : index
    %c0_23 = arith.constant 0 : index
    %38 = vector.load %arg10[%c2, %c0_23] : memref<8x128xf32, #tpu.memory_space<vmem>>, vector<1x128xf32>
    %c3 = arith.constant 3 : index
    %c0_24 = arith.constant 0 : index
    %39 = vector.load %arg10[%c3, %c0_24] : memref<8x128xf32, #tpu.memory_space<vmem>>, vector<1x128xf32>
    %c0_25 = arith.constant 0 : index
    %c0_26 = arith.constant 0 : index
    %40 = vector.load %arg6[%c0_25, %c0_26] : memref<128x128xf32, #tpu.memory_space<vmem>>, vector<128x128xf32>
    %cst_27 = arith.constant dense<0.000000e+00> : vector<8x128xf32>
    %41 = tpu.matmul %35, %40, %cst_27 {dimension_numbers = #tpu.dot_dimension_numbers<[1], [0], [0], [1], [0, 0, 1, 1], [], []>} : vector<8x128xf32>, vector<128x128xf32>, vector<8x128xf32> -> vector<8x128xf32>
    %42 = vector.broadcast %36 : vector<1x128xf32> to vector<8x128xf32>
    %43 = arith.addf %41, %42 : vector<8x128xf32>
    %44 = math.tanh %43 : vector<8x128xf32>
    %c0_28 = arith.constant 0 : index
    %c0_29 = arith.constant 0 : index
    %45 = vector.load %arg8[%c0_28, %c0_29] : memref<128x128xf32, #tpu.memory_space<vmem>>, vector<128x128xf32>
    %cst_30 = arith.constant dense<0.000000e+00> : vector<8x128xf32>
    %46 = tpu.matmul %44, %45, %cst_30 {dimension_numbers = #tpu.dot_dimension_numbers<[1], [0], [0], [1], [0, 0, 1, 1], [], []>} : vector<8x128xf32>, vector<128x128xf32>, vector<8x128xf32> -> vector<8x128xf32>
    %47 = vector.broadcast %38 : vector<1x128xf32> to vector<8x128xf32>
    %48 = arith.addf %46, %47 : vector<8x128xf32>
    %c0_31 = arith.constant 0 : index
    %c0_32 = arith.constant 0 : index
    %49 = vector.load %arg11[%c0_31, %c0_32] : memref<8x128xf32, #tpu.memory_space<vmem>>, vector<8x128xf32>
    tpu.vector_store %arg11[%c0_31, %c0_32], %48 {strides = array<i32>} : memref<8x128xf32, #tpu.memory_space<vmem>>, vector<8x128xf32>,
    %c0_33 = arith.constant 0 : index
    %c0_34 = arith.constant 0 : index
    %50 = vector.load %arg7[%c0_33, %c0_34] : memref<128x128xf32, #tpu.memory_space<vmem>>, vector<128x128xf32>
    %cst_35 = arith.constant dense<0.000000e+00> : vector<8x128xf32>
    %51 = tpu.matmul %0, %50, %cst_35 {dimension_numbers = #tpu.dot_dimension_numbers<[1], [0], [0], [1], [0, 0, 1, 1], [], []>} : vector<8x128xf32>, vector<128x128xf32>, vector<8x128xf32> -> vector<8x128xf32>
    %52 = vector.broadcast %37 : vector<1x128xf32> to vector<8x128xf32>
    %53 = arith.addf %51, %52 : vector<8x128xf32>
    %54 = math.tanh %53 : vector<8x128xf32>
    %c0_36 = arith.constant 0 : index
    %c0_37 = arith.constant 0 : index
    %55 = vector.load %arg9[%c0_36, %c0_37] : memref<128x128xf32, #tpu.memory_space<vmem>>, vector<128x128xf32>
    %cst_38 = arith.constant dense<0.000000e+00> : vector<8x128xf32>
    %56 = tpu.matmul %54, %55, %cst_38 {dimension_numbers = #tpu.dot_dimension_numbers<[1], [0], [0], [1], [0, 0, 1, 1], [], []>} : vector<8x128xf32>, vector<128x128xf32>, vector<8x128xf32> -> vector<8x128xf32>
    %57 = vector.broadcast %39 : vector<1x128xf32> to vector<8x128xf32>
    %58 = arith.addf %56, %57 : vector<8x128xf32>
    %c0_39 = arith.constant 0 : index
    %c0_40 = arith.constant 0 : index
    %59 = vector.load %arg12[%c0_39, %c0_40] : memref<8x128xf32, #tpu.memory_space<vmem>>, vector<8x128xf32>
    tpu.vector_store %arg12[%c0_39, %c0_40], %58 {strides = array<i32>} : memref<8x128xf32, #tpu.memory_space<vmem>>, vector<8x128xf32>,
    return
  }
  func.func @transform_0(%arg0: i32) -> (i32, i32) {
    %c0_i32 = arith.constant 0 : i32
    %c0_i32_0 = arith.constant 0 : i32
    return %arg0, %c0_i32 : i32, i32
  }
  func.func @transform_1(%arg0: i32) -> (i32, i32) {
    %c0_i32 = arith.constant 0 : i32
    %c0_i32_0 = arith.constant 0 : i32
    %c0_i32_1 = arith.constant 0 : i32
    return %c0_i32, %c0_i32_0 : i32, i32
  }
  func.func @transform_2(%arg0: i32) -> (i32, i32) {
    %c0_i32 = arith.constant 0 : i32
    %c0_i32_0 = arith.constant 0 : i32
    %c0_i32_1 = arith.constant 0 : i32
    return %c0_i32, %c0_i32_0 : i32, i32
  }
  func.func @transform_3(%arg0: i32) -> (i32, i32) {
    %c0_i32 = arith.constant 0 : i32
    %c0_i32_0 = arith.constant 0 : i32
    %c0_i32_1 = arith.constant 0 : i32
    return %c0_i32, %c0_i32_0 : i32, i32
  }
  func.func @transform_4(%arg0: i32) -> (i32, i32) {
    %c0_i32 = arith.constant 0 : i32
    %c0_i32_0 = arith.constant 0 : i32
    %c0_i32_1 = arith.constant 0 : i32
    return %c0_i32, %c0_i32_0 : i32, i32
  }
  func.func @transform_5(%arg0: i32) -> (i32, i32) {
    %c0_i32 = arith.constant 0 : i32
    %c0_i32_0 = arith.constant 0 : i32
    %c0_i32_1 = arith.constant 0 : i32
    return %c0_i32, %c0_i32_0 : i32, i32
  }
  func.func @transform_6(%arg0: i32) -> (i32, i32) {
    %c0_i32 = arith.constant 0 : i32
    %c0_i32_0 = arith.constant 0 : i32
    %c0_i32_1 = arith.constant 0 : i32
    return %c0_i32, %c0_i32_0 : i32, i32
  }
  func.func @transform_7(%arg0: i32) -> (i32, i32) {
    %c0_i32 = arith.constant 0 : i32
    %c0_i32_0 = arith.constant 0 : i32
    %c0_i32_1 = arith.constant 0 : i32
    return %c0_i32, %c0_i32_0 : i32, i32
  }
  func.func @transform_8(%arg0: i32) -> (i32, i32) {
    %c0_i32 = arith.constant 0 : i32
    %c0_i32_0 = arith.constant 0 : i32
    %c0_i32_1 = arith.constant 0 : i32
    return %c0_i32, %c0_i32_0 : i32, i32
  }
  func.func @transform_9(%arg0: i32) -> (i32, i32) {
    %c0_i32 = arith.constant 0 : i32
    %c0_i32_0 = arith.constant 0 : i32
    %c0_i32_1 = arith.constant 0 : i32
    return %c0_i32, %c0_i32_0 : i32, i32
  }
  func.func @transform_10(%arg0: i32) -> (i32, i32) {
    %c0_i32 = arith.constant 0 : i32
    %c0_i32_0 = arith.constant 0 : i32
    return %arg0, %c0_i32 : i32, i32
  }
  func.func @transform_11(%arg0: i32) -> (i32, i32) {
    %c0_i32 = arith.constant 0 : i32
    %c0_i32_0 = arith.constant 0 : i32
    return %arg0, %c0_i32 : i32, i32
  }
}

</mosaic_0001>

<bundles_post_ra>
// kernel: _forward.1
= control target key start
LH: loop header
LB: loop body
LE: loop exit
PB: predicated region body
PF: predicated region fallthrough
CT: control target
= control target key end

     0   :  { %17 = vsyncpa [#allocation4], 0  ;;  %s1706_s0 = inlined_call_operand.vmem [shape: f32[8,128], index: 0, kind: input, shape index: {}]   ;;  %s1707_s1 = inlined_call_operand.vmem [shape: f32[8,128], index: 1, kind: input, shape index: {}]   ;;  %s1708_s2 = inlined_call_operand.vmem [shape: f32[8,128], index: 2, kind: input, shape index: {}]   ;;  %s1709_s3 = inlined_call_operand.vmem [shape: f32[128,128], index: 3, kind: input, shape index: {}]   ;;  %s1710_s4 = inlined_call_operand.vmem [shape: f32[8,128], index: 4, kind: input, shape index: {}]   ;;  %s1711_s5 = inlined_call_operand.hbm [shape: f32[128,128], index: 5, kind: input, shape index: {}]   ;;  %s1712_s6 = inlined_call_operand.hbm [shape: f32[128,128], index: 6, kind: input, shape index: {}]   ;;  %s1713_s7 = inlined_call_operand.hbm [shape: f32[128,128], index: 7, kind: input, shape index: {}]   ;;  %s1714_s8 = inlined_call_operand.hbm [shape: f32[128,128], index: 8, kind: input, shape index: {}]   ;;  %s1715_s9 = inlined_call_operand.vmem [shape: f32[8,128], index: 9, kind: input, shape index: {}]   ;;  %s1716_s10 = inlined_call_operand.vmem [shape: f32[8,128], index: 10, kind: output, shape index: {0}]   ;;  %s1717_s11 = inlined_call_operand.vmem [shape: f32[8,128], index: 11, kind: output, shape index: {1}]  }
   0x1   :  { %18 = vsyncpa [#allocation6], 0 }
   0x2   :  { %19 = vsyncpa [#allocation9], 0  ;;  %s1410_s17 = smov [#allocation5]   ;;  %s1411_s19 = smov [#allocation3]  }
   0x3   :  { %s47_s18 = sshll.u32 %s1410_s17, 4  ;;  %s35_s20 = sshll.u32 %s1411_s19, 4  ;;  %s48_s18 = int_to_ptr.vmem [resolvable:$true] %s47_s18  ;;  %s1480_s20 = int_to_ptr.vmem [resolvable:$true] %s35_s20 }
   0x4   :  { %s1316_s23 = scalar_lea.hbm %s1712_s6, 2048 }
   0x5   :  { %p1317_p0 = scmp.ne.s32.totalorder %s1712_s6, %s1316_s23  ;;  %p1320_p1 = scmp.lt.u32.totalorder %s1316_s23, %s1712_s6 }
   0x7   :  { %p1322_p2 = pnand %p1320_p1, %p1317_p0 }
   0x9   :  { %1325 = shalt.err (!%p1322_p2)
}
   0xa   :  { %s1326_s28 = scalar_lea.vmem %s48_s18, 2048  ;;  %p1331_p4 = scmp.lt.s32.totalorder %s48_s18, %s48_s18 }
   0xb   :  { %p1327_p3 = scmp.ne.s32.totalorder %s48_s18, %s1326_s28  ;;  %p1332_p5 = scmp.lt.s32.totalorder %s1326_s28, %s1326_s28 }
   0xd   :  { %p1333_p6 = por %p1332_p5, %p1331_p4 }
   0xf   :  { %p1334_p7 = pnand %p1333_p6, %p1327_p3 }
  0x11   :  { %1337 = shalt.err (!%p1334_p7)
}
  0x12   :  { %s1412_s29 = smov 128   ;;  %s1413_s30 = smov 8  }
  0x13   :  { %53 = dma.hbm_to_vmem [thread:$0]  %s1712_s6, 2048, %s48_s18, [#allocation6], %s1412_s29, %s1412_s29, %s1413_s30  }
  0x14   :  { %s1338_s16 = scalar_lea.hbm %s1711_s5, 2048 }
  0x15   :  { %p1339_p8 = scmp.ne.s32.totalorder %s1711_s5, %s1338_s16  ;;  %p1342_p9 = scmp.lt.u32.totalorder %s1338_s16, %s1711_s5 }
  0x17   :  { %p1344_p10 = pnand %p1342_p9, %p1339_p8 }
  0x19   :  { %1347 = shalt.err (!%p1344_p10)
}
  0x1a   :  { %s1348_s23 = scalar_lea.vmem %s1480_s20, 2048  ;;  %p1353_p12 = scmp.lt.s32.totalorder %s1480_s20, %s1480_s20 }
  0x1b   :  { %p1349_p11 = scmp.ne.s32.totalorder %s1480_s20, %s1348_s23  ;;  %p1354_p13 = scmp.lt.s32.totalorder %s1348_s23, %s1348_s23 }
  0x1d   :  { %p1355_p0 = por %p1354_p13, %p1353_p12 }
  0x1f   :  { %p1356_p1 = pnand %p1355_p0, %p1349_p11 }
  0x21   :  { %1359 = shalt.err (!%p1356_p1)
}
  0x22   :  { %41 = dma.hbm_to_vmem [thread:$0]  %s1711_s5, 2048, %s1480_s20, [#allocation4], %s1412_s29, %s1412_s29, %s1413_s30  }
  0x23   :  { %s1414_s24 = smov [#allocation7]   ;;  %s1415_s26 = smov [#allocation8]  }
  0x24   :  { %s59_s25 = sshll.u32 %s1414_s24, 4  ;;  %s71_s27 = sshll.u32 %s1415_s26, 4  ;;  %s60_s25 = int_to_ptr.vmem [resolvable:$true] %s59_s25  ;;  %s1517_s27 = int_to_ptr.vmem [resolvable:$true] %s71_s27 }
  0x25   :  { %s1360_s13 = scalar_lea.hbm %s1713_s7, 2048 }
  0x26   :  { %p1361_p2 = scmp.ne.s32.totalorder %s1713_s7, %s1360_s13  ;;  %p1364_p3 = scmp.lt.u32.totalorder %s1360_s13, %s1713_s7 }
  0x28   :  { %p1366_p4 = pnand %p1364_p3, %p1361_p2 }
  0x2a   :  { %1369 = shalt.err (!%p1366_p4)
}
  0x2b   :  { %s1370_s5 = scalar_lea.vmem %s60_s25, 2048  ;;  %p1375_p6 = scmp.lt.s32.totalorder %s60_s25, %s60_s25 }
  0x2c   :  { %p1371_p5 = scmp.ne.s32.totalorder %s60_s25, %s1370_s5  ;;  %p1376_p7 = scmp.lt.s32.totalorder %s1370_s5, %s1370_s5 }
  0x2e   :  { %p1377_p8 = por %p1376_p7, %p1375_p6 }
  0x30   :  { %p1378_p9 = pnand %p1377_p8, %p1371_p5 }
  0x32   :  { %1381 = shalt.err (!%p1378_p9)
}
  0x33   :  { %65 = dma.hbm_to_vmem [thread:$0]  %s1713_s7, 2048, %s60_s25, [#allocation6], %s1412_s29, %s1412_s29, %s1413_s30  }
  0x34   :  { %s1382_s23 = scalar_lea.hbm %s1714_s8, 2048 }
  0x35   :  { %p1383_p10 = scmp.ne.s32.totalorder %s1714_s8, %s1382_s23  ;;  %p1386_p11 = scmp.lt.u32.totalorder %s1382_s23, %s1714_s8 }
  0x37   :  { %p1388_p12 = pnand %p1386_p11, %p1383_p10 }
  0x39   :  { %1391 = shalt.err (!%p1388_p12)
}
  0x3a   :  { %s1392_s28 = scalar_lea.vmem %s1517_s27, 2048  ;;  %p1397_p0 = scmp.lt.s32.totalorder %s1517_s27, %s1517_s27 }
  0x3b   :  { %p1393_p13 = scmp.ne.s32.totalorder %s1517_s27, %s1392_s28  ;;  %p1398_p1 = scmp.lt.s32.totalorder %s1392_s28, %s1392_s28 }
  0x3d   :  { %p1399_p2 = por %p1398_p1, %p1397_p0 }
  0x3f   :  { %p1400_p3 = pnand %p1399_p2, %p1393_p13 }
  0x41   :  { %1403 = shalt.err (!%p1400_p3)
}
  0x42   :  { %77 = dma.hbm_to_vmem [thread:$0]  %s1714_s8, 2048, %s1517_s27, [#allocation9], %s1412_s29, %s1412_s29, %s1413_s30  }
  0x43   :  { %1404 = dma.done.wait [#allocation4], 2048  }
  0x44   :  { %1405 = vsyncadd [#allocation4], 4294965248 }
  0x45   :  { %1406 = dma.done.wait [#allocation6], 4096  }
  0x46   :  { %1407 = vsyncadd [#allocation6], 4294963200 }
  0x47   :  { %1408 = dma.done.wait [#allocation9], 2048  }
  0x48   :  { %1409 = vsyncadd [#allocation9], 4294965248  ;;  %v1416_v0 = vmov 0.0|0.0   ;;  %vm1417_vm0 = vmmov 0   ;;  %v1418_v1 = vmov 0.0   ;;  %v95_v2 = vld [vmem:[%s1709_s3] sm:$0xff]  ;;  %v191_v27 = vlaneseq }
  0x49   :  { %1161 = vmatprep.subr.bf16.mxu0 %v1416_v0  ;;  %1013 = vmatprep.mubr.msk.f32.mxu0 %vm1417_vm0, %v1418_v1  ;;  %v96_v3 = vld [vmem:[%s1709_s3 + $0x8] sm:$0xff]  ;;  %v97_v4 = vld [vmem:[%s1709_s3 + $0x10] sm:$0xff]  ;;  %v98_v6 = vld [vmem:[%s1709_s3 + $0x18] sm:$0xff]  ;;  %v1419_v31 = vmov 1966171168   ;;  %vm362_vm1 = vcmask 1041409  }
  0x4a   :  { %1016 = vmatprep.subr.mxu1 %v1418_v1  ;;  %1018 = vmatprep.mubr.msk.f32.mxu1 %vm1417_vm0, %v1418_v1  ;;  %v1162_v5 = vpack.c.bf16 %v96_v3, %v95_v2  ;;  %v1165_v7 = vpack.c.bf16 %v98_v6, %v97_v4  ;;  %v99_v8 = vld [vmem:[%s1709_s3 + $0x20] sm:$0xff]  ;;  %v100_v9 = vld [vmem:[%s1709_s3 + $0x28] sm:$0xff]  ;;  %v101_v11 = vld [vmem:[%s1709_s3 + $0x30] sm:$0xff]  ;;  %v192_v28 = vshrl.u32 %v191_v27, 7  ;;  %v329_v29 = vand.u32 127, %v191_v27 }
  0x4b   :  { %v1168_v10 = vpack.c.bf16 %v100_v9, %v99_v8  ;;  %v102_v12 = vld [vmem:[%s1709_s3 + $0x38] sm:$0xff]  ;;  %v103_v14 = vld [vmem:[%s1709_s3 + $0x40] sm:$0xff]  ;;  %v104_v15 = vld [vmem:[%s1709_s3 + $0x48] sm:$0xff]  ;;  %v189_v32 = vunpack.c.l.s4 %v1419_v31  ;;  %vm364_vm2 = vcmask 1042434   ;;  %vm366_vm3 = vcmask 1043459  }
  0x4c   :  { %1163 = vmatpush3.bf16.msra.mxu0 %v1162_v5  ;;  %v1171_v13 = vpack.c.bf16 %v102_v12, %v101_v11  ;;  %v1174_v16 = vpack.c.bf16 %v104_v15, %v103_v14  ;;  %v105_v17 = vld [vmem:[%s1709_s3 + $0x50] sm:$0xff]  ;;  %v106_v18 = vld [vmem:[%s1709_s3 + $0x58] sm:$0xff]  ;;  %v107_v20 = vld [vmem:[%s1709_s3 + $0x60] sm:$0xff]  ;;  %v1624_v30 = vsub.s32 %v329_v29, %v192_v28  ;;  %v238_v43 = vsub.s32 0, %v192_v28 }
  0x4d   :  { %1164 = vmatprep.subr.bf16.mxu0 %v1416_v0  ;;  %v1177_v19 = vpack.c.bf16 %v106_v18, %v105_v17  ;;  %v108_v21 = vld [vmem:[%s1709_s3 + $0x68] sm:$0xff]  ;;  %v109_v23 = vld [vmem:[%s1709_s3 + $0x70] sm:$0xff]  ;;  %v110_v24 = vld [vmem:[%s1709_s3 + $0x78] sm:$0xff]  ;;  %v190_v33 = vunpack.c.0.s8 %v189_v32  ;;  %vm368_vm4 = vcmask 1044484   ;;  %vm370_vm5 = vcmask 1045509  }
  0x4e   :  { %v1180_v22 = vpack.c.bf16 %v108_v21, %v107_v20  ;;  %v1183_v25 = vpack.c.bf16 %v110_v24, %v109_v23  ;;  %v1618_v26 = vld [vmem:[%s1706_s0] sm:$0xff]  ;;  %vm372_vm6 = vcmask 1046534   ;;  %vm374_vm7 = vcmask 1047559  }
  0x4f   :  { %v193_v34 = vsub.s32 %v190_v33, %v192_v28  ;;  %v185_v35 = vld [vmem:[%s1708_s2] sm:$0xff]  ;;  %vm377_vm8 = vcmask 64512  }
  0x50   :  { %1166 = vmatpush3.bf16.msra.mxu0 %v1165_v7  ;;  %v187_v37 = vcombine.high %v185_v35, %v185_v35  ;;  %v887_v46 = vld [vmem:[%s1710_s4] ss:$0 sm:$0xff]  ;;  %v888_v8 = vld [vmem:[%s1710_s4 + $0x1] ss:$0 sm:$0xff] }
  0x51   :  { %1167 = vmatprep.subr.bf16.mxu0 %v1416_v0  ;;  %v194_v36 = vrot.slane %v185_v35, %v193_v34 }
  0x52   :  { %v201_v41 = vrot.slane %v187_v37, %v193_v34 }
  0x53   :  { %v202_v38 = vcombine.high %v194_v36, %v194_v36  ;;  %v210_v39 = vrot.slane %v194_v36, %v193_v34 }
  0x54   :  { %1169 = vmatpush3.bf16.msra.mxu0 %v1168_v10  ;;  %v203_v45 = vcombine.high %v201_v41, %v201_v41  ;;  %v217_v53 = vrot.slane %v201_v41, %v193_v34 }
  0x55   :  { %1170 = vmatprep.subr.bf16.mxu0 %v1416_v0  ;;  %v224_v40 = vrot.slane %v202_v38, %v193_v34  ;;  %v232_v42 = vcombine.high %v210_v39, %v210_v39  ;;  %v239_v48 = vrot.slane %v210_v39, %v238_v43 }
  0x56   :  { %v231_v50 = vrot.slane %v203_v45, %v193_v34  ;;  %v255_v62 = vrot.slane %v217_v53, %v238_v43  ;;  %v233_v63 = vcombine.high %v217_v53, %v217_v53 }
  0x57   :  { %v234_v44 = vcombine.high %v224_v40, %v224_v40  ;;  %v247_v47 = vrot.slane %v232_v42, %v238_v43  ;;  %v243_v52 = vrot.slane %v224_v40, %v238_v43 }
  0x58   :  { %1172 = vmatpush3.bf16.msra.mxu0 %v1171_v13  ;;  %v259_v56 = vrot.slane %v231_v50, %v238_v43  ;;  %v235_v60 = vcombine.high %v231_v50, %v231_v50  ;;  %v263_v5 = vrot.slane %v233_v63, %v238_v43 }
  0x59   :  { %1173 = vmatprep.subr.bf16.mxu0 %v1416_v0  ;;  %v251_v49 = vrot.slane %v234_v44, %v238_v43 }
  0x5a   :  { %v267_v3 = vrot.slane %v235_v60, %v238_v43 }
  0x5c   :  { %1175 = vmatpush3.bf16.msra.mxu0 %v1174_v16 }
  0x5d   :  { %1176 = vmatprep.subr.bf16.mxu0 %v1416_v0 }
  0x60   :  { %1178 = vmatpush3.bf16.msra.mxu0 %v1177_v19 }
  0x61   :  { %1179 = vmatprep.subr.bf16.mxu0 %v1416_v0 }
  0x64   :  { %1181 = vmatpush3.bf16.msra.mxu0 %v1180_v22 }
  0x65   :  { %1182 = vmatprep.subr.bf16.mxu0 %v1416_v0 }
  0x68   :  { %1184 = vmatpush3.bf16.msra.mxu0 %v1183_v25  ;;  %v402_v25 = vld [vmem:[%s1707_s1] sm:$0xff] }
  0x69   :  { %1209 = vmatprep.subr.bf16.mxu0 %v1416_v0  ;;  %1017 = vmatpush3.msra.mxu1 %v402_v25  ;;  %v521_v25 = vld [vmem:[#allocation3 + $0x48] sm:$0xff] }
  0x6a   :  { %1185 = vmatprep.subr.bf16.mxu1 %v1416_v0 }
  0x6b   :  { %1014 = vmatmul.mubr.f32.vlgmr.msra.gmra.mrb[0].mxu0 %v1618_v26 }
  0x6c   :  { %1088 = vmatprep.mubr.msk.f32.mxu0 %vm1417_vm0, %v1418_v1 }
 0x13e   :  { %v181_v51 = vpop.f32.mrb[0].mxu0 }
 0x13f   :  { %v182_v54 = vadd.f32 %v887_v46, %v181_v51  ;;  %v1015_v55 = vpop.f32.mrb[1].mxu0 }
 0x141   :  { %v278_v57 = vadd.f32 %v247_v47, %v182_v54  ;;  %v276_v58 = vadd.f32 %v239_v48, %v182_v54  ;;  %v279_v59 = vadd.f32 %v251_v49, %v182_v54  ;;  %v277_v61 = vadd.f32 %v243_v52, %v182_v54 }
 0x142   :  { %v281_v2 = vadd.f32 %v259_v56, %v182_v54  ;;  %v280_v4 = vadd.f32 %v255_v62, %v182_v54  ;;  %v283_v6 = vadd.f32 %v267_v3, %v182_v54  ;;  %v282_v7 = vadd.f32 %v263_v5, %v182_v54 }
 0x143   :  { %1292 = vtanh.f32 %v278_v57 }
 0x144   :  { %1294 = vtanh.f32 %v276_v58 }
 0x145   :  { %1296 = vtanh.f32 %v279_v59 }
 0x146   :  { %1298 = vtanh.f32 %v277_v61 }
 0x147   :  { %1300 = vtanh.f32 %v281_v2 }
 0x148   :  { %1302 = vtanh.f32 %v280_v4 }
 0x149   :  { %1304 = vtanh.f32 %v283_v6 }
 0x14a   :  { %1306 = vtanh.f32 %v282_v7 }
 0x14d   :  { %v1293_v9 = vpop.eup %1292 }
 0x14e   :  { %v1295_v10 = vpop.eup %1294  ;;  %v298_v11 = vmul.f32 %v1293_v9, %v888_v8 }
 0x14f   :  { %v1297_v12 = vpop.eup %1296  ;;  %v296_v13 = vmul.f32 %v1295_v10, %v888_v8 }
 0x150   :  { %v1299_v14 = vpop.eup %1298  ;;  %308 = vadd.xlane.f32.xlu1 %v298_v11  ;;  %v299_v15 = vmul.f32 %v1297_v12, %v888_v8  ;;  %v512_v11 = vld [vmem:[#allocation3] sm:$0xff]  ;;  %v513_v12 = vld [vmem:[#allocation3 + $0x8] sm:$0xff] }
 0x151   :  { %304 = vadd.xlane.f32.xlu0 %v296_v13  ;;  %v1301_v16 = vpop.eup %1300  ;;  %v297_v17 = vmul.f32 %v1299_v14, %v888_v8  ;;  %v1186_v13 = vpack.c.bf16 %v513_v12, %v512_v11  ;;  %v514_v14 = vld [vmem:[#allocation3 + $0x10] sm:$0xff]  ;;  %v707_v11 = vld [vmem:[#allocation5 + $0x68] sm:$0xff] }
 0x152   :  { %v1303_v18 = vpop.eup %1302  ;;  %v301_v19 = vmul.f32 %v1301_v16, %v888_v8 }
 0x153   :  { %v1305_v20 = vpop.eup %1304  ;;  %v300_v21 = vmul.f32 %v1303_v18, %v888_v8  ;;  %v516_v18 = vld [vmem:[#allocation3 + $0x20] sm:$0xff] }
 0x154   :  { %310 = vadd.xlane.f32.xlu1 %v299_v15  ;;  %v1307_v22 = vpop.eup %1306  ;;  %v303_v23 = vmul.f32 %v1305_v20, %v888_v8  ;;  %v515_v15 = vld [vmem:[#allocation3 + $0x18] sm:$0xff] }
 0x155   :  { %306 = vadd.xlane.f32.xlu0 %v297_v17  ;;  %v302_v24 = vmul.f32 %v1307_v22, %v888_v8  ;;  %v1189_v17 = vpack.c.bf16 %v515_v15, %v514_v14  ;;  %v519_v22 = vld [vmem:[#allocation3 + $0x38] sm:$0xff] }
 0x156   :  { %v709_v14 = vld [vmem:[#allocation5 + $0x78] sm:$0xff] }
 0x158   :  { %314 = vadd.xlane.f32.xlu1 %v301_v19  ;;  %v517_v19 = vld [vmem:[#allocation3 + $0x28] sm:$0xff] }
 0x159   :  { %312 = vadd.xlane.f32.xlu0 %v300_v21  ;;  %v1192_v20 = vpack.c.bf16 %v517_v19, %v516_v18  ;;  %v518_v21 = vld [vmem:[#allocation3 + $0x30] sm:$0xff]  ;;  %v615_v18 = vld [vmem:[#allocation7 + $0x60] sm:$0xff] }
 0x15c   :  { %318 = vadd.xlane.f32.xlu1 %v303_v23  ;;  %v1195_v23 = vpack.c.bf16 %v519_v22, %v518_v21  ;;  %v617_v22 = vld [vmem:[#allocation7 + $0x70] sm:$0xff] }
 0x15d   :  { %316 = vadd.xlane.f32.xlu0 %v302_v24  ;;  %v520_v24 = vld [vmem:[#allocation3 + $0x40] sm:$0xff] }
 0x1dd   :  { %v309_v27 = vpop.xlane.xlu1 %308 }
 0x1de   :  { %v305_v28 = vpop.xlane.xlu0 %304  ;;  %v341_v34 = vrot.slane %v309_v27, %v1624_v30  ;;  %v1198_v27 = vpack.c.bf16 %v521_v25, %v520_v24 }
 0x1df   :  { %v333_v32 = vrot.slane %v305_v28, %v1624_v30  ;;  %v522_v28 = vld [vmem:[#allocation3 + $0x50] sm:$0xff] }
 0x1e1   :  { %v311_v29 = vpop.xlane.xlu1 %310 }
 0x1e2   :  { %v307_v31 = vpop.xlane.xlu0 %306  ;;  %v345_v35 = vrot.slane %v311_v29, %v1624_v30  ;;  %v523_v29 = vld [vmem:[#allocation3 + $0x58] sm:$0xff] }
 0x1e3   :  { %v337_v33 = vrot.slane %v307_v31, %v1624_v30  ;;  %v1201_v31 = vpack.c.bf16 %v523_v29, %v522_v28  ;;  %v785_v29 = vld [vmem:[#allocation8] sm:$0xff] }
 0x1e5   :  { %v363_v36 = vsel %vm362_vm1, %v337_v33, %v333_v32  ;;  %v315_v37 = vpop.xlane.xlu1 %314  ;;  %v524_v32 = vld [vmem:[#allocation3 + $0x60] sm:$0xff]  ;;  %v525_v33 = vld [vmem:[#allocation3 + $0x68] sm:$0xff] }
 0x1e6   :  { %v365_v38 = vsel %vm364_vm2, %v341_v34, %v363_v36  ;;  %v313_v39 = vpop.xlane.xlu0 %312  ;;  %v353_v42 = vrot.slane %v315_v37, %v1624_v30  ;;  %v1204_v34 = vpack.c.bf16 %v525_v33, %v524_v32  ;;  %v527_v36 = vld [vmem:[#allocation3 + $0x78] sm:$0xff]  ;;  %v787_v33 = vld [vmem:[#allocation8 + $0x10] sm:$0xff] }
 0x1e7   :  { %v367_v40 = vsel %vm366_vm3, %v345_v35, %v365_v38  ;;  %v349_v41 = vrot.slane %v313_v39, %v1624_v30  ;;  %v526_v35 = vld [vmem:[#allocation3 + $0x70] sm:$0xff]  ;;  %v603_v38 = vld [vmem:[#allocation7] sm:$0xff]  ;;  %v604_v39 = vld [vmem:[#allocation7 + $0x8] sm:$0xff] }
 0x1e8   :  { %v1207_v37 = vpack.c.bf16 %v527_v36, %v526_v35 }
 0x1e9   :  { %v369_v43 = vsel %vm368_vm4, %v349_v41, %v367_v40  ;;  %v319_v44 = vpop.xlane.xlu1 %318  ;;  %v605_v40 = vld [vmem:[#allocation7 + $0x10] sm:$0xff]  ;;  %v1210_v41 = vpack.c.bf16 %v604_v39, %v603_v38  ;;  %v790_v38 = vld [vmem:[#allocation8 + $0x28] sm:$0xff] }
 0x1ea   :  { %v361_v45 = vrot.slane %v319_v44, %v1624_v30  ;;  %v317_v46 = vpop.xlane.xlu0 %316  ;;  %v371_v48 = vsel %vm370_vm5, %v353_v42, %v369_v43  ;;  %v606_v42 = vld [vmem:[#allocation7 + $0x18] sm:$0xff]  ;;  %v607_v44 = vld [vmem:[#allocation7 + $0x20] sm:$0xff] }
 0x1eb   :  { %v357_v47 = vrot.slane %v317_v46, %v1624_v30  ;;  %1211 = vmatpush3.bf16.msra.mxu0 %v1210_v41  ;;  %v1213_v43 = vpack.c.bf16 %v606_v42, %v605_v40  ;;  %v791_v40 = vld [vmem:[#allocation8 + $0x30] sm:$0xff]  ;;  %v792_v41 = vld [vmem:[#allocation8 + $0x38] sm:$0xff] }
 0x1ec   :  { %1212 = vmatprep.subr.bf16.mxu0 %v1416_v0  ;;  %v1267_v42 = vpack.c.bf16 %v792_v41, %v791_v40 }
 0x1ed   :  { %v373_v49 = vsel %vm372_vm6, %v357_v47, %v371_v48  ;;  %v609_v47 = vld [vmem:[#allocation7 + $0x30] sm:$0xff]  ;;  %v610_v48 = vld [vmem:[#allocation7 + $0x38] sm:$0xff] }
 0x1ee   :  { %v375_v50 = vsel %vm374_vm7, %v361_v45, %v373_v49  ;;  %v608_v45 = vld [vmem:[#allocation7 + $0x28] sm:$0xff]  ;;  %v1219_v49 = vpack.c.bf16 %v610_v48, %v609_v47  ;;  %v892_v47 = vld [vmem:[%s1715_s9 + $0x1] ss:$0 sm:$0xff] }
 0x1ef   :  { %378 = vst.msk [vmem:[#allocation2] sm:$0xff] %vm377_vm8, %v375_v50  ;;  %1214 = vmatpush3.bf16.msra.mxu0 %v1213_v43  ;;  %v1216_v46 = vpack.c.bf16 %v608_v45, %v607_v44  ;;  %v611_v50 = vld [vmem:[#allocation7 + $0x40] sm:$0xff]  ;;  %v794_v44 = vld [vmem:[#allocation8 + $0x48] sm:$0xff] }
 0x1f0   :  { %1215 = vmatprep.subr.bf16.mxu0 %v1416_v0  ;;  %v793_v43 = vld [vmem:[#allocation8 + $0x40] sm:$0xff] }
 0x1f1   :  { %v1270_v45 = vpack.c.bf16 %v794_v44, %v793_v43 }
 0x1f3   :  { %1217 = vmatpush3.bf16.msra.mxu0 %v1216_v46  ;;  %v796_v46 = vld [vmem:[#allocation8 + $0x58] sm:$0xff] }
 0x1f4   :  { %1218 = vmatprep.subr.bf16.mxu0 %v1416_v0 }
 0x1f6   :  { %v379_v51 = vld [vmem:[#allocation2] sm:$0xff] }
 0x1f7   :  { %v380_v52 = vsel %vm377_vm8, %v379_v51, -inf  ;;  %1220 = vmatpush3.bf16.msra.mxu0 %v1219_v49 }
 0x1f8   :  { %v381_v53 = vrot.slane %v380_v52, 4  ;;  %1221 = vmatprep.subr.bf16.mxu0 %v1416_v0 }
 0x1fa   :  { %v382_v54 = vmax.f32 %v380_v52, %v381_v53  ;;  %v694_v53 = vld [vmem:[#allocation5] sm:$0xff] }
 0x1fc   :  { %v383_v55 = vrot.slane %v382_v54, 2 }
 0x1fe   :  { %v384_v56 = vmax.f32 %v382_v54, %v383_v55  ;;  %v695_v54 = vld [vmem:[#allocation5 + $0x8] sm:$0xff] }
 0x1ff   :  { %v1234_v55 = vpack.c.bf16 %v695_v54, %v694_v53 }
 0x200   :  { %v385_v57 = vrot.slane %v384_v56, 1 }
 0x202   :  { %v386_v58 = vmax.f32 %v384_v56, %v385_v57  ;;  %v696_v56 = vld [vmem:[#allocation5 + $0x10] sm:$0xff]  ;;  %v697_v57 = vld [vmem:[#allocation5 + $0x18] sm:$0xff] }
 0x204   :  { %v387_v59 = vsub.f32 %v379_v51, %v386_v58  ;;  %v612_v51 = vld [vmem:[#allocation7 + $0x48] sm:$0xff] }
 0x205   :  { %v1222_v52 = vpack.c.bf16 %v612_v51, %v611_v50  ;;  %v797_v50 = vld [vmem:[#allocation8 + $0x60] sm:$0xff]  ;;  %v798_v51 = vld [vmem:[#allocation8 + $0x68] sm:$0xff] }
 0x206   :  { %v388_v60 = vmul.f32 1.442695, %v387_v59  ;;  %v1276_v54 = vpack.c.bf16 %v798_v51, %v797_v50 }
 0x207   :  { %1223 = vmatpush3.bf16.msra.mxu0 %v1222_v52 }
 0x208   :  { %1308 = vpow2.f32 %v388_v60  ;;  %1224 = vmatprep.subr.bf16.mxu0 %v1416_v0  ;;  %v1237_v60 = vpack.c.bf16 %v697_v57, %v696_v56  ;;  %v800_v56 = vld [vmem:[#allocation8 + $0x78] sm:$0xff] }
 0x212   :  { %v1309_v61 = vpop.eup %1308 }
 0x213   :  { %v390_v30 = vsel %vm377_vm8, %v1309_v61, 0.0 }
 0x214   :  { %v391_v62 = vrot.slane %v390_v30, 4 }
 0x216   :  { %v392_v63 = vadd.f32 %v391_v62, %v390_v30  ;;  %v699_v30 = vld [vmem:[#allocation5 + $0x28] sm:$0xff] }
 0x218   :  { %v393_v2 = vrot.slane %v392_v63, 2 }
 0x21a   :  { %v394_v3 = vadd.f32 %v393_v2, %v392_v63  ;;  %v700_v63 = vld [vmem:[#allocation5 + $0x30] sm:$0xff]  ;;  %v701_v2 = vld [vmem:[#allocation5 + $0x38] sm:$0xff] }
 0x21c   :  { %v395_v4 = vrot.slane %v394_v3, 1 }
 0x21e   :  { %v396_v5 = vadd.f32 %v395_v4, %v394_v3  ;;  %v1243_v3 = vpack.c.bf16 %v701_v2, %v700_v63  ;;  %v702_v4 = vld [vmem:[#allocation5 + $0x40] sm:$0xff] }
 0x220   :  { %1310 = vrcp.f32 %v396_v5 }
 0x22a   :  { %v1311_v6 = vpop.eup %1310 }
 0x22b   :  { %v398_v7 = vmul.f32 %v1311_v6, %v396_v5  ;;  %v703_v5 = vld [vmem:[#allocation5 + $0x48] sm:$0xff] }
 0x22d   :  { %v399_v8 = vsub.f32 2.0, %v398_v7  ;;  %v704_v7 = vld [vmem:[#allocation5 + $0x50] sm:$0xff] }
 0x22f   :  { %v400_v9 = vmul.f32 %v1311_v6, %v399_v8  ;;  %v1246_v6 = vpack.c.bf16 %v703_v5, %v702_v4  ;;  %v705_v8 = vld [vmem:[#allocation5 + $0x58] sm:$0xff] }
 0x231   :  { %v401_v10 = vmul.f32 %v1309_v61, %v400_v9  ;;  %v698_v61 = vld [vmem:[#allocation5 + $0x20] sm:$0xff]  ;;  %v1249_v9 = vpack.c.bf16 %v705_v8, %v704_v7 }
 0x232   :  { %v1240_v62 = vpack.c.bf16 %v699_v30, %v698_v61 }
 0x233   :  { %403 = vxpose.xlu0.b32.start.end [1/1] (short) (narrow) %v401_v10, 8  ;;  %v706_v10 = vld [vmem:[#allocation5 + $0x60] sm:$0xff] }
 0x234   :  { %v1252_v12 = vpack.c.bf16 %v707_v11, %v706_v10 }
 0x2b3   :  { %v419_v16 = vpop.trf.xlu0 }
 0x2b4   :  { %1019 = vmatmul.mubr.msk.f32.vlgmr.msra.gmra.mrb[0].mxu1 %vm377_vm8, %v419_v16  ;;  %v613_v16 = vld [vmem:[#allocation7 + $0x50] sm:$0xff] }
 0x2b5   :  { %1187 = vmatpush3.bf16.msra.mxu1 %v1186_v13  ;;  %1053 = vmatprep.mubr.msk.f32.mxu1 %vm1417_vm0, %v1418_v1  ;;  %v708_v13 = vld [vmem:[#allocation5 + $0x70] sm:$0xff] }
 0x2b6   :  { %1188 = vmatprep.subr.bf16.mxu1 %v1416_v0  ;;  %v1255_v15 = vpack.c.bf16 %v709_v14, %v708_v13 }
 0x2b9   :  { %1190 = vmatpush3.bf16.msra.mxu1 %v1189_v17  ;;  %v614_v17 = vld [vmem:[#allocation7 + $0x58] sm:$0xff] }
 0x2ba   :  { %1191 = vmatprep.subr.bf16.mxu1 %v1416_v0  ;;  %v1225_v19 = vpack.c.bf16 %v614_v17, %v613_v16 }
 0x2bc   :  { %1226 = vmatpush3.bf16.msra.mxu0 %v1225_v19 }
 0x2bd   :  { %1193 = vmatpush3.bf16.msra.mxu1 %v1192_v20  ;;  %v616_v20 = vld [vmem:[#allocation7 + $0x68] sm:$0xff]  ;;  %1227 = vmatprep.subr.bf16.mxu0 %v1416_v0 }
 0x2be   :  { %1194 = vmatprep.subr.bf16.mxu1 %v1416_v0  ;;  %v1228_v21 = vpack.c.bf16 %v616_v20, %v615_v18 }
 0x2c0   :  { %1229 = vmatpush3.bf16.msra.mxu0 %v1228_v21 }
 0x2c1   :  { %1196 = vmatpush3.bf16.msra.mxu1 %v1195_v23  ;;  %v618_v23 = vld [vmem:[#allocation7 + $0x78] sm:$0xff]  ;;  %1230 = vmatprep.subr.bf16.mxu0 %v1416_v0 }
 0x2c2   :  { %1197 = vmatprep.subr.bf16.mxu1 %v1416_v0  ;;  %v1231_v24 = vpack.c.bf16 %v618_v23, %v617_v22 }
 0x2c4   :  { %1232 = vmatpush3.bf16.msra.mxu0 %v1231_v24 }
 0x2c5   :  { %1199 = vmatpush3.bf16.msra.mxu1 %v1198_v27  ;;  %1257 = vmatprep.subr.bf16.mxu0 %v1416_v0 }
 0x2c6   :  { %1200 = vmatprep.subr.bf16.mxu1 %v1416_v0 }
 0x2c9   :  { %1202 = vmatpush3.bf16.msra.mxu1 %v1201_v31  ;;  %v786_v31 = vld [vmem:[#allocation8 + $0x8] sm:$0xff] }
 0x2ca   :  { %1203 = vmatprep.subr.bf16.mxu1 %v1416_v0  ;;  %v1258_v32 = vpack.c.bf16 %v786_v31, %v785_v29 }
 0x2cd   :  { %1205 = vmatpush3.bf16.msra.mxu1 %v1204_v34  ;;  %v788_v34 = vld [vmem:[#allocation8 + $0x18] sm:$0xff] }
 0x2ce   :  { %1206 = vmatprep.subr.bf16.mxu1 %v1416_v0  ;;  %v1261_v36 = vpack.c.bf16 %v788_v34, %v787_v33 }
 0x2d1   :  { %1208 = vmatpush3.bf16.msra.mxu1 %v1207_v37  ;;  %v789_v37 = vld [vmem:[#allocation8 + $0x20] sm:$0xff] }
 0x2d2   :  { %1233 = vmatprep.subr.bf16.mxu1 %v1416_v0  ;;  %v1264_v39 = vpack.c.bf16 %v790_v38, %v789_v37 }
 0x387   :  { %v504_v58 = vpop.f32.mrb[0].mxu1 }
 0x388   :  { %v1020_v59 = vpop.f32.mrb[1].mxu1  ;;  %1054 = vmatmul.mubr.f32.vlgmr.msra.gmra.mrb[2].mxu1 %v504_v58 }
 0x389   :  { %1235 = vmatpush3.bf16.msra.mxu1 %v1234_v55  ;;  %1123 = vmatprep.mubr.msk.f32.mxu1 %vm1417_vm0, %v1418_v1  ;;  %v799_v55 = vld [vmem:[#allocation8 + $0x70] sm:$0xff] }
 0x38a   :  { %1236 = vmatprep.subr.bf16.mxu1 %v1416_v0  ;;  %v1279_v57 = vpack.c.bf16 %v800_v56, %v799_v55  ;;  %v891_v59 = vld [vmem:[%s1715_s9 + $0x2] ss:$0 sm:$0xff] }
 0x38d   :  { %1238 = vmatpush3.bf16.msra.mxu1 %v1237_v60 }
 0x38e   :  { %1239 = vmatprep.subr.bf16.mxu1 %v1416_v0 }
 0x391   :  { %1241 = vmatpush3.bf16.msra.mxu1 %v1240_v62  ;;  %v893_v62 = vld [vmem:[%s1715_s9 + $0x3] ss:$0 sm:$0xff] }
 0x392   :  { %1242 = vmatprep.subr.bf16.mxu1 %v1416_v0 }
 0x395   :  { %1244 = vmatpush3.bf16.msra.mxu1 %v1243_v3 }
 0x396   :  { %1245 = vmatprep.subr.bf16.mxu1 %v1416_v0 }
 0x399   :  { %1247 = vmatpush3.bf16.msra.mxu1 %v1246_v6 }
 0x39a   :  { %1248 = vmatprep.subr.bf16.mxu1 %v1416_v0 }
 0x39d   :  { %1250 = vmatpush3.bf16.msra.mxu1 %v1249_v9 }
 0x39e   :  { %1251 = vmatprep.subr.bf16.mxu1 %v1416_v0 }
 0x3a1   :  { %1253 = vmatpush3.bf16.msra.mxu1 %v1252_v12 }
 0x3a2   :  { %1254 = vmatprep.subr.bf16.mxu1 %v1416_v0 }
 0x3a5   :  { %1256 = vmatpush3.bf16.msra.mxu1 %v1255_v15 }
 0x3a8   :  { %1124 = vmatmul.mubr.f32.vlgmr.msra.gmra.mrb[4].mxu1 %v1618_v26  ;;  %v890_v26 = vld [vmem:[%s1715_s9] ss:$0 sm:$0xff] }
 0x45b   :  { %v598_v25 = vpop.f32.mrb[2].mxu1 }
 0x45c   :  { %v599_v27 = vadd.f32 %v890_v26, %v598_v25  ;;  %v1055_v28 = vpop.f32.mrb[3].mxu1 }
 0x45e   :  { %1312 = vtanh.f32 %v599_v27 }
 0x468   :  { %v1313_v35 = vpop.eup %1312 }
 0x469   :  { %1089 = vmatmul.mubr.f32.vlgmr.msra.gmra.mrb[2].mxu0 %v1313_v35 }
 0x46a   :  { %1259 = vmatpush3.bf16.msra.mxu0 %v1258_v32  ;;  %1158 = vmatprep.mubr.msk.f32.mxu0 %vm1417_vm0, %v1418_v1  ;;  %v795_v1 = vld [vmem:[#allocation8 + $0x50] sm:$0xff] }
 0x46b   :  { %1260 = vmatprep.subr.bf16.mxu0 %v1416_v0  ;;  %v1273_v48 = vpack.c.bf16 %v796_v46, %v795_v1 }
 0x46e   :  { %1262 = vmatpush3.bf16.msra.mxu0 %v1261_v36 }
 0x46f   :  { %1263 = vmatprep.subr.bf16.mxu0 %v1416_v0 }
 0x472   :  { %1265 = vmatpush3.bf16.msra.mxu0 %v1264_v39 }
 0x473   :  { %1266 = vmatprep.subr.bf16.mxu0 %v1416_v0 }
 0x476   :  { %1268 = vmatpush3.bf16.msra.mxu0 %v1267_v42 }
 0x477   :  { %1269 = vmatprep.subr.bf16.mxu0 %v1416_v0 }
 0x47a   :  { %1271 = vmatpush3.bf16.msra.mxu0 %v1270_v45 }
 0x47b   :  { %v780_v49 = vpop.f32.mrb[4].mxu1  ;;  %1272 = vmatprep.subr.bf16.mxu0 %v1416_v0 }
 0x47c   :  { %v781_v52 = vadd.f32 %v892_v47, %v780_v49  ;;  %v1125_v53 = vpop.f32.mrb[5].mxu1 }
 0x47e   :  { %1314 = vtanh.f32 %v781_v52  ;;  %1274 = vmatpush3.bf16.msra.mxu0 %v1273_v48 }
 0x47f   :  { %1275 = vmatprep.subr.bf16.mxu0 %v1416_v0 }
 0x482   :  { %1277 = vmatpush3.bf16.msra.mxu0 %v1276_v54 }
 0x483   :  { %1278 = vmatprep.subr.bf16.mxu0 %v1416_v0 }
 0x486   :  { %1280 = vmatpush3.bf16.msra.mxu0 %v1279_v57 }
 0x488   :  { %v1315_v58 = vpop.eup %1314 }
 0x489   :  { %1159 = vmatmul.mubr.f32.vlgmr.msra.gmra.mrb[4].mxu0 %v1315_v58 }
 0x53c   :  { %v689_v60 = vpop.f32.mrb[2].mxu0 }
 0x53d   :  { %v690_v61 = vadd.f32 %v891_v59, %v689_v60  ;;  %v1090_v30 = vpop.f32.mrb[3].mxu0 }
 0x53f   :  { %693 = vst [vmem:[%s1716_s10] sm:$0xff] %v690_v61 }
 0x55c   :  { %v871_v63 = vpop.f32.mrb[4].mxu0 }
 0x55d   :  { %v872_v0 = vadd.f32 %v893_v62, %v871_v63  ;;  %v1160_v2 = vpop.f32.mrb[5].mxu0 }
 0x55f   :  { %875 = vst [vmem:[%s1717_s11] sm:$0xff] %v872_v0 }
 0x560   :  { %884 = vsyncpa [#allocation4], 1 }
 0x561   :  { %885 = vsyncpa [#allocation6], 1 }
 0x562   :  { %886 = vsyncpa [#allocation9], 1 }

</bundles_post_ra>
